<compile_context>
chip_gen: v5e
topology: v5e:2x2
jax: 0.10.0
libtpu: 0.0.40
codegen_flags: <defaults>
</compile_context>

<pallas_src>
import jax
import jax.numpy as jnp
from jax.experimental import pallas as pl
from jax.experimental.pallas import tpu as pltpu


_LANE = 128


def _round_up(x, m):
    return -(-x // m) * m


def _plan_tiles(n, max_tile, align=_LANE, target_grid=2):
    """Return (tile, n_pad, grid): lane-aligned tile, padded extent, grid size.

    - Tiles are multiples of 128 (lane-dense, unmasked vector stores) unless the
      whole axis fits in a single sub-128 block (full-extent blocks are exempt).
    - Awkward n is padded up instead of falling back to one huge block.
    - Keep >= target_grid tiles when possible so ("parallel",) grid sharding
      actually uses both TensorCores on v7x.
    """
    if n <= align:
        return n, n, 1
    n_pad = _round_up(n, align)
    tile = max(align, (min(max_tile, n_pad) // align) * align)
    while tile > align and -(-n_pad // tile) < target_grid:
        tile = max(align, ((tile // 2) // align) * align)
    n_pad = _round_up(n_pad, tile)
    return tile, n_pad, n_pad // tile


def _pad_lanes(x, n_pad):
    n = x.shape[-1]
    if n_pad == n:
        return x
    return jnp.pad(x, [(0, 0)] * (x.ndim - 1) + [(0, n_pad - n)])


# ----------------------------------------------------------------------------
# Kernel 1: clip-space vertex transform, planar & tiled over V (VPU only)
#   clip[c, :] = mvp[c,0]*x + mvp[c,1]*y + mvp[c,2]*z + mvp[c,3]
# The homogeneous pad is folded into the mvp[:, 3] column; the 4x3 "matmul"
# is far too small for the MXU, so it is done with broadcast-FMAs with mvp
# held as SMEM scalars (frees the vector-extended slot, no weight DMAs).
# ----------------------------------------------------------------------------
def _vertex_clip_kernel(mvp_ref, vp_ref, out_ref):
    v0 = vp_ref[0:1, :]
    v1 = vp_ref[1:2, :]
    v2 = vp_ref[2:3, :]
    for c in range(4):                       # static, unrolled at trace time
        out_ref[c:c + 1, :] = (mvp_ref[c, 0] * v0 + mvp_ref[c, 1] * v1
                               + mvp_ref[c, 2] * v2 + mvp_ref[c, 3])


def vertex_clip(vertices_p, mvp, max_tile=4096):
    """vertices_p: (3, V) planar f32, mvp: (4, 4) f32 -> (4, V) clip coords."""
    V = vertices_p.shape[-1]
    tile, v_pad, grid = _plan_tiles(V, max_tile)
    vp = _pad_lanes(vertices_p.astype(jnp.float32), v_pad)
    clip_p = pl.pallas_call(
        _vertex_clip_kernel,
        out_shape=jax.ShapeDtypeStruct((4, v_pad), jnp.float32),
        grid=(grid,),
        in_specs=[pl.BlockSpec(memory_space=pltpu.MemorySpace.SMEM),  # mvp 4x4
                  pl.BlockSpec((3, tile), lambda i: (0, i))],
        out_specs=pl.BlockSpec((4, tile), lambda i: (0, i)),
        compiler_params=pltpu.CompilerParams(
            dimension_semantics=("parallel",)),
    )(mvp.astype(jnp.float32), vp)
    return clip_p[:, :V] if v_pad != V else clip_p


# ----------------------------------------------------------------------------
# Kernel 2: fused normalize + shading MLP + alpha composite
#   one grid over pixel tiles, every tensor planar (C, TILE_N), lane-dense I/O
# ----------------------------------------------------------------------------
def _fused_pixel_kernel(bg_ref, dirs_ref, xyz_ref, mask_ref, z_ref,
                        w1x_ref, w1d_ref, b1_ref, w2_ref, b2_ref,
                        img_ref, depth_ref):
    # --- ray-direction normalization (VPU mul/add + EUP rsqrt, no XLU) ------
    d = dirs_ref[...]                                    # (3, T)
    d0 = d[0:1, :]
    d1 = d[1:2, :]
    d2 = d[2:3, :]
    # tiny eps guards zero-length / padded rays against inf*0 -> NaN
    inv = jax.lax.rsqrt(d0 * d0 + d1 * d1 + d2 * d2 + 1e-20)
    dn = d * inv                                         # (3, T)

    # --- stand-in shading MLP (abstract self.rgb): pixels stay on lanes -----
    # (two K=3 dots; fusing into one K=6 dot is a minor MXU-side win only —
    #  the kernel is HBM-bandwidth bound.)
    xyz = xyz_ref[...]                                   # (3, T)
    h = jnp.dot(w1x_ref[...], xyz, preferred_element_type=jnp.float32)
    h = h + jnp.dot(w1d_ref[...], dn, preferred_element_type=jnp.float32)
    h = jnp.maximum(h + b1_ref[...], 0.0)                # (HID, T)
    rgb = jnp.dot(w2_ref[...], h, preferred_element_type=jnp.float32)
    rgb = jax.nn.sigmoid(rgb + b2_ref[...])              # (3, T)

    # --- alpha composite (antialias untranslatable -> alpha == mask) --------
    # a in {0,1}: a*rgb already zeros masked-out pixels (rgbs[mask] = ...).
    a = jnp.clip(mask_ref[...], 0.0, 1.0)                # (1, T)
    rgb = jnp.clip(rgb, 0.0, 1.0)
    bg = bg_ref[0]                                       # SMEM scalar
    img_ref[...] = a * rgb + (1.0 - a) * bg
    depth_ref[...] = a * z_ref[...]


def shade_and_composite(dirs_p, xyz_p, mask_p, z_p, mlp_params, bg_scalar,
                        max_tile=32768):
    """All pixel streams planar / channels-first (no wrapper transposes):
    dirs_p, xyz_p: (3, N); mask_p, z_p: (1, N) -> ((3, N), (1, N))."""
    N = dirs_p.shape[-1]
    w1, b1, w2, b2 = mlp_params
    hid = w1.shape[1]

    tile, n_pad, grid = _plan_tiles(N, max_tile)
    dirs_p = _pad_lanes(dirs_p, n_pad)
    xyz_p = _pad_lanes(xyz_p, n_pad)
    mask_p = _pad_lanes(mask_p, n_pad)
    z_p = _pad_lanes(z_p, n_pad)

    # Weight layouts so pixels stay on the lane axis of every matmul.
    w1x_t = jnp.transpose(w1[:3, :])         # (HID, 3)
    w1d_t = jnp.transpose(w1[3:, :])         # (HID, 3)
    b1_c = jnp.reshape(b1, (hid, 1))         # (HID, 1)
    w2_t = jnp.transpose(w2)                 # (3, HID)
    b2_c = jnp.reshape(b2, (3, 1))           # (3, 1)
    bg = jnp.asarray(bg_scalar, jnp.float32).reshape((1,))

    # Scoped-VMEM budget: double-buffered I/O + (HID,T) hidden + temporaries.
    # Keeps large tiles legal on v5e (16 MiB default scoped) and safely under
    # v7x's 64 MiB physical cap.
    work_bytes = 4 * tile * (2 * (3 + 3 + 1 + 1) + 2 * (3 + 1) + hid + 9)
    vmem_limit = int(min(max(work_bytes * 3 // 2, 16 * 2**20), 40 * 2**20))

    img_p, depth_p = pl.pallas_call(
        _fused_pixel_kernel,
        out_shape=(jax.ShapeDtypeStruct((3, n_pad), jnp.float32),
                   jax.ShapeDtypeStruct((1, n_pad), jnp.float32)),
        grid=(grid,),
        in_specs=[
            pl.BlockSpec(memory_space=pltpu.MemorySpace.SMEM),   # bg scalar
            pl.BlockSpec((3, tile), lambda i: (0, i)),           # ray dirs
            pl.BlockSpec((3, tile), lambda i: (0, i)),           # xyz
            pl.BlockSpec((1, tile), lambda i: (0, i)),           # mask
            pl.BlockSpec((1, tile), lambda i: (0, i)),           # z
            pl.BlockSpec((hid, 3), lambda i: (0, 0)),            # W1[:3].T
            pl.BlockSpec((hid, 3), lambda i: (0, 0)),            # W1[3:].T
            pl.BlockSpec((hid, 1), lambda i: (0, 0)),            # b1
            pl.BlockSpec((3, hid), lambda i: (0, 0)),            # W2.T
            pl.BlockSpec((3, 1), lambda i: (0, 0)),              # b2
        ],
        out_specs=(pl.BlockSpec((3, tile), lambda i: (0, i)),
                   pl.BlockSpec((1, tile), lambda i: (0, i))),
        compiler_params=pltpu.CompilerParams(
            dimension_semantics=("parallel",),
            vmem_limit_bytes=vmem_limit),
    )(bg, dirs_p, xyz_p, mask_p, z_p, w1x_t, w1d_t, b1_c, w2_t, b2_c)

    if n_pad != N:
        img_p = img_p[:, :N]
        depth_p = depth_p[:, :N]
    return img_p, depth_p


# ----------------------------------------------------------------------------
# render_mesh (Pallas version) — channels-first / planar end-to-end
# ----------------------------------------------------------------------------
def render_mesh_pallas(vertices_p, mvp, rays_d_p, rast_xyzs_p, rast_z,
                       rast_mask, mlp_params, h, w, bg_color=1.0,
                       max_pixel_tile=32768):
    """
    vertices_p:  (3, V)     planar mesh vertices
    mvp:         (4, 4)     model-view-projection matrix
    rays_d_p:    (3, h, w)  unnormalized ray directions (channels-first)
    rast_xyzs_p: (3, h*w)   per-pixel interpolated surface positions (synthetic)
    rast_z:      (h*w,)     per-pixel raster depth (synthetic)
    rast_mask:   (h*w,)     per-pixel coverage mask, {0,1} float (synthetic)
    bg_color:    scalar background color
    Returns image (3, h, w), depth (h, w), vertices_clip (4, V).
    """
    N = h * w

    # 1) clip-space vertex transform (kept for parity with render_mesh; the
    #    rasterizer that would consume it is untranslatable).
    vertices_clip = vertex_clip(vertices_p, mvp)   # (4, V)

    # TODO(synk): dr.rasterize / dr.interpolate / dr.antialias (nvdiffrast GL
    # rasterization) have no Pallas equivalent; rast_xyzs/rast_z/rast_mask are
    # supplied as deterministic synthetic raster outputs instead.

    # TODO(synk): per-pixel (h, w, 3) bg_color tensors are not supported by the
    # fused kernel; only the scalar path (bg_color=None -> 1) is implemented.
    assert jnp.ndim(bg_color) == 0, "only scalar bg_color is supported"

    # 2-4) fused: normalize dirs + shading MLP + alpha composite.
    # reshapes below are contiguous views — no HBM round trips.
    img_p, depth_p = shade_and_composite(
        rays_d_p.reshape(3, N), rast_xyzs_p.reshape(3, N),
        rast_mask.reshape(1, N), rast_z.reshape(1, N),
        mlp_params, bg_color, max_tile=max_pixel_tile)

    return {
        "image": img_p.reshape(3, h, w),
        "depth": depth_p.reshape(h, w),
        "vertices_clip": vertices_clip,
    }


# ----------------------------------------------------------------------------
# Deterministic inputs + pure-JAX reference + smoke test
# ----------------------------------------------------------------------------
if __name__ == "__main__":
    key = jax.random.PRNGKey(0)
    kv, kd, kx, kz, kw1, kw2 = jax.random.split(key, 6)

    V = 512            # vertices of the loaded base mesh (synthetic)
    h0 = w0 = 16       # render resolution (ssaa == 1)
    N = h0 * w0
    HID = 32           # hidden width of the stand-in shading MLP
    BG = 1.0

    # synthetic mesh + camera (planar / channels-first layouts)
    vertices_p = jax.random.uniform(kv, (3, V), jnp.float32, -1.0, 1.0)
    mvp = jnp.eye(4, dtype=jnp.float32) + 0.01 * jnp.arange(
        16, dtype=jnp.float32).reshape(4, 4)

    # rays (channels-first)
    rays_d_p = jax.random.normal(kd, (3, h0, w0), jnp.float32) + 1e-3

    # synthetic rasterizer outputs (see TODO in render_mesh_pallas)
    rast_xyzs_p = jax.random.uniform(kx, (3, N), jnp.float32, -1.0, 1.0)
    rast_z = jax.random.uniform(kz, (N,), jnp.float32, 0.0, 1.0)
    ii = jnp.arange(N)
    rast_mask = ((ii % 3) != 0).astype(jnp.float32)

    # deterministic stand-in shading-MLP parameters: (3+3) -> HID -> 3
    w1 = 0.1 * jax.random.normal(kw1, (6, HID), jnp.float32)
    b1 = jnp.zeros((1, HID), jnp.float32)
    w2 = 0.1 * jax.random.normal(kw2, (HID, 3), jnp.float32)
    b2 = jnp.zeros((1, 3), jnp.float32)
    mlp_params = (w1, b1, w2, b2)

    results = render_mesh_pallas(vertices_p, mvp, rays_d_p, rast_xyzs_p,
                                 rast_z, rast_mask, mlp_params, h0, w0,
                                 bg_color=BG)
    jax.block_until_ready(results)

    # ---- pure-JAX reference (channels-last, mirrors the PyTorch math) ------
    def reference():
        v = jnp.transpose(vertices_p)                                # (V, 3)
        vh = jnp.concatenate([v, jnp.ones((V, 1), jnp.float32)], -1)
        vclip = vh @ mvp.T                                           # (V, 4)
        d = jnp.transpose(rays_d_p.reshape(3, -1))                   # (N, 3)
        dn = d / jnp.linalg.norm(d, axis=-1, keepdims=True)
        x = jnp.concatenate([jnp.transpose(rast_xyzs_p), dn], -1)    # (N, 6)
        hdn = jnp.maximum(x @ w1 + b1, 0.0)
        rgb = jax.nn.sigmoid(hdn @ w2 + b2)
        m = rast_mask.reshape(-1, 1)
        rgb = jnp.where(m > 0.0, rgb, 0.0)
        a = jnp.clip(m, 0.0, 1.0)
        img = a * jnp.clip(rgb, 0.0, 1.0) + (1.0 - a) * BG
        depth = a[:, 0] * rast_z
        return vclip, img, depth

    ref_clip, ref_img, ref_depth = reference()

    assert results["image"].shape == (3, h0, w0)
    assert results["depth"].shape == (h0, w0)
    assert results["vertices_clip"].shape == (4, V)
    assert bool(jnp.all(jnp.isfinite(results["image"])))
    assert bool(jnp.allclose(jnp.transpose(results["vertices_clip"]), ref_clip,
                             atol=1e-3, rtol=1e-3))
    assert bool(jnp.allclose(jnp.transpose(results["image"].reshape(3, -1)),
                             ref_img, atol=1e-3, rtol=1e-3))
    assert bool(jnp.allclose(results["depth"].reshape(-1), ref_depth,
                             atol=1e-3, rtol=1e-3))
    print("KERNEL_OK")
</pallas_src>

<mosaic_0001>
module attributes {stable_mosaic.version = 11 : i64} {
  func.func @_vertex_clip_kernel(%arg0: i32, %arg1: memref<4x4xf32, #tpu.memory_space<smem>>, %arg2: memref<3x256xf32, #tpu.memory_space<vmem>>, %arg3: memref<4x256xf32, #tpu.memory_space<vmem>>) attributes {dimension_semantics = [#tpu.dimension_semantics<parallel>], iteration_bounds = array<i64: 2>, scalar_prefetch = 0 : i64, scratch_operands = 0 : i64, tpu.core_type = #tpu.core_type<tc>, window_params = [{transform_indices = @transform_0, window_bounds = array<i64: 4, 4>}, {transform_indices = @transform_1, window_bounds = array<i64: 3, 256>}, {transform_indices = @transform_2, window_bounds = array<i64: 4, 256>}]} {
    %c0 = arith.constant 0 : index
    %c0_0 = arith.constant 0 : index
    %0 = vector.load %arg2[%c0, %c0_0] : memref<3x256xf32, #tpu.memory_space<vmem>>, vector<1x256xf32>
    %c1 = arith.constant 1 : index
    %c0_1 = arith.constant 0 : index
    %1 = vector.load %arg2[%c1, %c0_1] : memref<3x256xf32, #tpu.memory_space<vmem>>, vector<1x256xf32>
    %c2 = arith.constant 2 : index
    %c0_2 = arith.constant 0 : index
    %2 = vector.load %arg2[%c2, %c0_2] : memref<3x256xf32, #tpu.memory_space<vmem>>, vector<1x256xf32>
    %c0_3 = arith.constant 0 : index
    %c0_4 = arith.constant 0 : index
    %3 = memref.load %arg1[%c0_3, %c0_4] : memref<4x4xf32, #tpu.memory_space<smem>>
    %4 = vector.broadcast %3 : f32 to vector<1x256xf32>
    %5 = arith.mulf %4, %0 : vector<1x256xf32>
    %c0_5 = arith.constant 0 : index
    %c1_6 = arith.constant 1 : index
    %6 = memref.load %arg1[%c0_5, %c1_6] : memref<4x4xf32, #tpu.memory_space<smem>>
    %7 = vector.broadcast %6 : f32 to vector<1x256xf32>
    %8 = arith.mulf %7, %1 : vector<1x256xf32>
    %9 = arith.addf %5, %8 : vector<1x256xf32>
    %c0_7 = arith.constant 0 : index
    %c2_8 = arith.constant 2 : index
    %10 = memref.load %arg1[%c0_7, %c2_8] : memref<4x4xf32, #tpu.memory_space<smem>>
    %11 = vector.broadcast %10 : f32 to vector<1x256xf32>
    %12 = arith.mulf %11, %2 : vector<1x256xf32>
    %13 = arith.addf %9, %12 : vector<1x256xf32>
    %c0_9 = arith.constant 0 : index
    %c3 = arith.constant 3 : index
    %14 = memref.load %arg1[%c0_9, %c3] : memref<4x4xf32, #tpu.memory_space<smem>>
    %15 = vector.broadcast %14 : f32 to vector<1x256xf32>
    %16 = arith.addf %13, %15 : vector<1x256xf32>
    %c0_10 = arith.constant 0 : index
    %c0_11 = arith.constant 0 : index
    %17 = vector.load %arg3[%c0_10, %c0_11] : memref<4x256xf32, #tpu.memory_space<vmem>>, vector<1x256xf32>
    tpu.vector_store %arg3[%c0_10, %c0_11], %16 {strides = array<i32>} : memref<4x256xf32, #tpu.memory_space<vmem>>, vector<1x256xf32>,
    %c1_12 = arith.constant 1 : index
    %c0_13 = arith.constant 0 : index
    %18 = memref.load %arg1[%c1_12, %c0_13] : memref<4x4xf32, #tpu.memory_space<smem>>
    %19 = vector.broadcast %18 : f32 to vector<1x256xf32>
    %20 = arith.mulf %19, %0 : vector<1x256xf32>
    %c1_14 = arith.constant 1 : index
    %c1_15 = arith.constant 1 : index
    %21 = memref.load %arg1[%c1_14, %c1_15] : memref<4x4xf32, #tpu.memory_space<smem>>
    %22 = vector.broadcast %21 : f32 to vector<1x256xf32>
    %23 = arith.mulf %22, %1 : vector<1x256xf32>
    %24 = arith.addf %20, %23 : vector<1x256xf32>
    %c1_16 = arith.constant 1 : index
    %c2_17 = arith.constant 2 : index
    %25 = memref.load %arg1[%c1_16, %c2_17] : memref<4x4xf32, #tpu.memory_space<smem>>
    %26 = vector.broadcast %25 : f32 to vector<1x256xf32>
    %27 = arith.mulf %26, %2 : vector<1x256xf32>
    %28 = arith.addf %24, %27 : vector<1x256xf32>
    %c1_18 = arith.constant 1 : index
    %c3_19 = arith.constant 3 : index
    %29 = memref.load %arg1[%c1_18, %c3_19] : memref<4x4xf32, #tpu.memory_space<smem>>
    %30 = vector.broadcast %29 : f32 to vector<1x256xf32>
    %31 = arith.addf %28, %30 : vector<1x256xf32>
    %c1_20 = arith.constant 1 : index
    %c0_21 = arith.constant 0 : index
    %32 = vector.load %arg3[%c1_20, %c0_21] : memref<4x256xf32, #tpu.memory_space<vmem>>, vector<1x256xf32>
    tpu.vector_store %arg3[%c1_20, %c0_21], %31 {strides = array<i32>} : memref<4x256xf32, #tpu.memory_space<vmem>>, vector<1x256xf32>,
    %c2_22 = arith.constant 2 : index
    %c0_23 = arith.constant 0 : index
    %33 = memref.load %arg1[%c2_22, %c0_23] : memref<4x4xf32, #tpu.memory_space<smem>>
    %34 = vector.broadcast %33 : f32 to vector<1x256xf32>
    %35 = arith.mulf %34, %0 : vector<1x256xf32>
    %c2_24 = arith.constant 2 : index
    %c1_25 = arith.constant 1 : index
    %36 = memref.load %arg1[%c2_24, %c1_25] : memref<4x4xf32, #tpu.memory_space<smem>>
    %37 = vector.broadcast %36 : f32 to vector<1x256xf32>
    %38 = arith.mulf %37, %1 : vector<1x256xf32>
    %39 = arith.addf %35, %38 : vector<1x256xf32>
    %c2_26 = arith.constant 2 : index
    %c2_27 = arith.constant 2 : index
    %40 = memref.load %arg1[%c2_26, %c2_27] : memref<4x4xf32, #tpu.memory_space<smem>>
    %41 = vector.broadcast %40 : f32 to vector<1x256xf32>
    %42 = arith.mulf %41, %2 : vector<1x256xf32>
    %43 = arith.addf %39, %42 : vector<1x256xf32>
    %c2_28 = arith.constant 2 : index
    %c3_29 = arith.constant 3 : index
    %44 = memref.load %arg1[%c2_28, %c3_29] : memref<4x4xf32, #tpu.memory_space<smem>>
    %45 = vector.broadcast %44 : f32 to vector<1x256xf32>
    %46 = arith.addf %43, %45 : vector<1x256xf32>
    %c2_30 = arith.constant 2 : index
    %c0_31 = arith.constant 0 : index
    %47 = vector.load %arg3[%c2_30, %c0_31] : memref<4x256xf32, #tpu.memory_space<vmem>>, vector<1x256xf32>
    tpu.vector_store %arg3[%c2_30, %c0_31], %46 {strides = array<i32>} : memref<4x256xf32, #tpu.memory_space<vmem>>, vector<1x256xf32>,
    %c3_32 = arith.constant 3 : index
    %c0_33 = arith.constant 0 : index
    %48 = memref.load %arg1[%c3_32, %c0_33] : memref<4x4xf32, #tpu.memory_space<smem>>
    %49 = vector.broadcast %48 : f32 to vector<1x256xf32>
    %50 = arith.mulf %49, %0 : vector<1x256xf32>
    %c3_34 = arith.constant 3 : index
    %c1_35 = arith.constant 1 : index
    %51 = memref.load %arg1[%c3_34, %c1_35] : memref<4x4xf32, #tpu.memory_space<smem>>
    %52 = vector.broadcast %51 : f32 to vector<1x256xf32>
    %53 = arith.mulf %52, %1 : vector<1x256xf32>
    %54 = arith.addf %50, %53 : vector<1x256xf32>
    %c3_36 = arith.constant 3 : index
    %c2_37 = arith.constant 2 : index
    %55 = memref.load %arg1[%c3_36, %c2_37] : memref<4x4xf32, #tpu.memory_space<smem>>
    %56 = vector.broadcast %55 : f32 to vector<1x256xf32>
    %57 = arith.mulf %56, %2 : vector<1x256xf32>
    %58 = arith.addf %54, %57 : vector<1x256xf32>
    %c3_38 = arith.constant 3 : index
    %c3_39 = arith.constant 3 : index
    %59 = memref.load %arg1[%c3_38, %c3_39] : memref<4x4xf32, #tpu.memory_space<smem>>
    %60 = vector.broadcast %59 : f32 to vector<1x256xf32>
    %61 = arith.addf %58, %60 : vector<1x256xf32>
    %c3_40 = arith.constant 3 : index
    %c0_41 = arith.constant 0 : index
    %62 = vector.load %arg3[%c3_40, %c0_41] : memref<4x256xf32, #tpu.memory_space<vmem>>, vector<1x256xf32>
    tpu.vector_store %arg3[%c3_40, %c0_41], %61 {strides = array<i32>} : memref<4x256xf32, #tpu.memory_space<vmem>>, vector<1x256xf32>,
    return
  }
  func.func @transform_0(%arg0: i32) -> (i32, i32) {
    %c0_i32 = arith.constant 0 : i32
    %c0_i32_0 = arith.constant 0 : i32
    %c0_i32_1 = arith.constant 0 : i32
    return %c0_i32, %c0_i32_0 : i32, i32
  }
  func.func @transform_1(%arg0: i32) -> (i32, i32) {
    %c0_i32 = arith.constant 0 : i32
    %c0_i32_0 = arith.constant 0 : i32
    return %c0_i32, %arg0 : i32, i32
  }
  func.func @transform_2(%arg0: i32) -> (i32, i32) {
    %c0_i32 = arith.constant 0 : i32
    %c0_i32_0 = arith.constant 0 : i32
    return %c0_i32, %arg0 : i32, i32
  }
}

</mosaic_0001>

<bundles_post_ra>
// kernel: tpu_custom_call.1
= control target key start
LH: loop header
LB: loop body
LE: loop exit
PB: predicated region body
PF: predicated region fallthrough
CT: control target
= control target key end

     0   :  { %7 = vsyncpa [#allocation5], 0  ;;  %s737_s0 = inlined_call_operand.hbm [shape: f32[4,4], index: 0, kind: input, shape index: {}]   ;;  %s738_s1 = inlined_call_operand.hbm [shape: f32[3,512], index: 1, kind: input, shape index: {}]   ;;  %s739_s2 = inlined_call_operand.hbm [shape: f32[4,512], index: 2, kind: output, shape index: {}]  }
   0x1   :  { %8 = vsyncpa [#allocation3], 0 }
   0x2   :  { %10 = vsyncpa [#allocation3 + $0x1], 0 }
   0x3   :  { %11 = vsyncpa [#allocation4], 0 }
   0x4   :  { %13 = vsyncpa [#allocation4 + $0x1], 0  ;;  %s577_s9 = smov 0   ;;  %s579_s10 = smov 0  }
   0x5   :  { %s581_s11 = smov 0   ;;  %s583_s12 = smov 0  }
   0x6 LB: > { %s598_s13 = sadd.s32 4294967295, %s559_s12   ;;  %s349_s14 = sadd.s32 4294967294, %s559_s12   ;;  %s559_s12 = sphi %s583_s12, %s751_s12   ;;  %s555_s11 = sphi %s581_s11, %s750_s11   ;;  %s551_s10 = sphi %s579_s10, %s749_s10   ;;  %s547_s9 = sphi %s577_s9, %s748_s9  }
   0x7   : > { %p60_p0 = scmp.ne.s32.totalorder %s551_s10, %s547_s9  ;;  %p61_p1 = scmp.eq.s32.totalorder %s598_s13, 0 }
   0x8   : > { %p84_p2 = scmp.eq.s32.totalorder %s598_s13, 1  ;;  %p90_p3 = scmp.eq.s32.totalorder %s349_s14, 1 }
   0x9   : > { %p607_p4 = por %p61_p1, %p60_p0  ;;  %p350_p5 = scmp.ge.s32.totalorder %s559_s12, 1 }
   0xa   : > { %p612_p6 = por %p90_p3, %p60_p0  ;;  %p97_p7 = scmp.lt.s32.totalorder %s559_s12, 3 }
   0xb   : > { %s109_s19 = sshll.u32 %s737_s0, 4  ;;  %s628_s21 = sadd.s32 1, %s559_s12   ;;  %s110_s19 = int_to_ptr.hbm [resolvable:$true] %s109_s19 }
   0xc   : > { %p620_p8 = pnand %p350_p5, %p97_p7  ;;  %s44_s22 = ssub.s32 %s559_s12, %s628_s21 }
   0xd   : > { %p45_p12 = scmp.eq.s32.totalorder %s44_s22, 0  ;;  %s47_s23 = sadd.s32 1, %s555_s11 }
   0xe   : > { %p395_p10 = pneg %p620_p8  ;;  %p54_p13 = scmp.ne.s32.totalorder %s555_s11, %s551_s10 }
   0xf   : > { %s561_s24 = smov [#allocation2]   ;;  %p55_p0 = scmp.eq.s32.totalorder %s559_s12, 0 }
  0x10   : > { %p396_p11 = pnand %p395_p10, %p61_p1  ;;  %p643_p3 = por %p84_p2, %p54_p13 }
  0x11   : > { %s638_s25 = scalar_select %p45_p12, %s555_s11, %s47_s23  }
  0x12   : > { %398 = dma.hbm_to_smem (!%p396_p11), %s110_s19, 64, %s561_s24, [#allocation5]  }
  0x13   : > { %s120_s27 = sand.u32 1, %s555_s11   ;;  %p56_p5 = por %p55_p0, %p54_p13 }
  0x14   : > { %p408_p7 = scmp.lt.s32.totalorder %s559_s12, 2  ;;  %s353_s28 = sshll.u32 %s120_s27, 3 }
  0x15   : > { %s385_s29 = sshll.u32 %s559_s12, 3  ;;  %s124_s6 = scalar_lea.vmem [#allocation6], %s353_s28 }
  0x16   : > { %s129_s4 = scalar_lea.hbm %s738_s1, %s385_s29  ;;  %s133_s7 = sshll.u32 %s124_s6, 4  ;;  %s134_s7 = int_to_ptr.vmem [resolvable:$true] %s133_s7 }
  0x17   : > { %s131_s5 = sshll.u32 %s129_s4, 4  ;;  %p653_p10 = pnand %p408_p7, %p56_p5  ;;  %s132_s5 = int_to_ptr.hbm [resolvable:$true] %s131_s5 }
  0x18   : > { %s121_s14 = scalar_lea.sflag [#allocation3], %s120_s27  ;;  %s459_s17 = sshra.s32 %s132_s5, 4  ;;  %s460_s17 = int_to_ptr.hbm [resolvable:$true] %s459_s17 }
  0x19   : > { %s461_s18 = scalar_lea.hbm %s460_s17, 8  ;;  %p463_p11 = pneg %p653_p10 }
  0x1a   : > { %p462_p2 = scmp.ne.s32.totalorder %s460_s17, %s461_s18  ;;  %s466_s23 = scalar_lea.hbm %s738_s1, 16 }
  0x1b   : > { %p467_p0 = scmp.lt.s32.totalorder %s460_s17, %s738_s1  ;;  %p468_p5 = scmp.lt.s32.totalorder %s466_s23, %s461_s18 }
  0x1c   : > { %p464_p12 = pnand %p463_p11, %p462_p2 }
  0x1d   : > { %p469_p7 = por %p468_p5, %p467_p0 }
  0x1e   : > { %p465_p13 = pneg %p464_p12 }
  0x20   : > { %p470_p9 = pnand %p469_p7, %p465_p13 }
  0x22   : > { %473 = shalt.err (!%p470_p9)
}
  0x23   : > { %402 = dma.hbm_to_vmem [thread:$0]  (!%p653_p10), %s132_s5, 128, %s134_s7, %s121_s14  }
  0x24   : > { %142 = sbr.rel (%p620_p8) target bundleno = 79 (0x4f), region = 28 }
  0x29   : > { %534 = dma.done.wait (%p61_p1), [#allocation5], 64  }
  0x2a   : > { %536 = vsyncadd (%p61_p1), [#allocation5], 4294967232  ;;  %s674_s27 = sand.u32 1, %s551_s10  }
  0x2b   : > { %s358_s29 = sshll.u32 %s674_s27, 3  ;;  %s150_s30 = scalar_lea.sflag [#allocation3], %s674_s27 }
  0x2c   : > { %s153_s3 = scalar_lea.vmem [#allocation6], %s358_s29 }
  0x2d   : > { %538 = dma.done.wait (%p607_p4), %s150_s30, 128  }
  0x2e   : > { %540 = vsyncadd (%p607_p4), %s150_s30, 4294967168 }
  0x2f   : > { %159 = sfence }
  0x30   : > { %s183_s20 = sld [smem:[#allocation2]]  ;;  %v178_v0 = vld [vmem:[%s153_s3] ss:$4 sm:$0x3]  ;;  %v197_v9 = vlaneseq }
  0x31   : > { %s362_s4 = sld [smem:[#allocation2 + $0x1]]  ;;  %v360_v1 = vld [vmem:[%s153_s3 + $0x1] ss:$4 sm:$0x3] }
  0x32   : > { %s363_s5 = sld [smem:[#allocation2 + $0x2]]  ;;  %v361_v3 = vld [vmem:[%s153_s3 + $0x2] ss:$4 sm:$0x3]  ;;  %vm688_vm0 = vcmp.lt.s32.totalorder %v197_v9, 256  ;;  %s175_s3 = scalar_lea.vmem [#allocation7], %s358_s29 }
  0x33   : > { %s364_s6 = sld [smem:[#allocation2 + $0x3]] }
  0x34   : > { %s365_s7 = sld [smem:[#allocation2 + $0x80]] }
  0x35   : > { %s366_s8 = sld [smem:[#allocation2 + $0x81]] }
  0x36   : > { %v184_v2 = vstv %s183_s20  ;;  %s367_s14 = sld [smem:[#allocation2 + $0x82]]  ;;  %s386_s20 = sshll.u32 %s598_s13, 3 }
  0x37   : > { %v185_v4 = vmul.f32 %v184_v2, %v178_v0  ;;  %v187_v5 = vstv %s362_s4  ;;  %s684_s17 = sld [smem:[#allocation2 + $0x83]]  ;;  %s264_s13 = sshll.u32 %s175_s3, 4  ;;  %s265_s13 = int_to_ptr.vmem [resolvable:$true] %s264_s13 }
  0x38   : > { %v188_v6 = vmul.f32 %v360_v1, %v187_v5  ;;  %v191_v7 = vstv %s363_s5  ;;  %s370_s15 = sld [smem:[#allocation2 + $0x100]]  ;;  %s262_s5 = scalar_lea.hbm %s739_s2, %s386_s20 }
  0x39   : > { %v192_v8 = vmul.f32 %v361_v3, %v191_v7  ;;  %s371_s18 = sld [smem:[#allocation2 + $0x101]]  ;;  %v195_v12 = vstv %s364_s6  ;;  %s266_s6 = sshll.u32 %s262_s5, 4  ;;  %s267_s6 = int_to_ptr.hbm [resolvable:$true] %s266_s6 }
  0x3a   : > { %v189_v10 = vadd.f32 %v188_v6, %v185_v4  ;;  %v203_v11 = vstv %s365_s7  ;;  %s372_s19 = sld [smem:[#allocation2 + $0x102]]  ;;  %s251_s7 = scalar_lea.sflag [#allocation4], %s674_s27 }
  0x3b   : > { %v204_v13 = vmul.f32 %v203_v11, %v178_v0  ;;  %v206_v14 = vstv %s366_s8  ;;  %s686_s22 = sld [smem:[#allocation2 + $0x103]]  ;;  %s503_s8 = sshra.s32 %s267_s6, 4  ;;  %s504_s8 = int_to_ptr.hbm [resolvable:$true] %s503_s8 }
  0x3c   : > { %v193_v15 = vadd.f32 %v192_v8, %v189_v10  ;;  %v207_v16 = vmul.f32 %v360_v1, %v206_v14  ;;  %v210_v17 = vstv %s367_s14  ;;  %s375_s23 = sld [smem:[#allocation2 + $0x180]]  ;;  %s505_s14 = scalar_lea.hbm %s504_s8, 8 }
  0x3d   : > { %v211_v19 = vmul.f32 %v361_v3, %v210_v17  ;;  %s376_s24 = sld [smem:[#allocation2 + $0x181]]  ;;  %v214_v23 = vstv %s684_s17  ;;  %p506_p1 = scmp.ne.s32.totalorder %s504_s8, %s505_s14 }
  0x3e   : > { %v196_v20 = vadd.f32 %v195_v12, %v193_v15  ;;  %v208_v21 = vadd.f32 %v207_v16, %v204_v13  ;;  %v219_v22 = vstv %s370_s15  ;;  %s377_s28 = sld [smem:[#allocation2 + $0x182]]  ;;  %p510_p9 = scmp.lt.s32.totalorder %s504_s8, %s739_s2 }
  0x3f   : > { %v220_v24 = vmul.f32 %v219_v22, %v178_v0  ;;  %v222_v25 = vstv %s371_s18  ;;  %s378_s30 = sld [smem:[#allocation2 + $0x183]]  ;;  %p507_p4 = pnand %p506_p1, %p643_p3 }
  0x40   : > { %201 = vst.msk [vmem:[%s175_s3] ss:$4 sm:$0x3] %vm688_vm0, %v196_v20  ;;  %v212_v26 = vadd.f32 %v211_v19, %v208_v21  ;;  %v223_v27 = vmul.f32 %v360_v1, %v222_v25  ;;  %v226_v28 = vstv %s372_s19  ;;  %s509_s18 = scalar_lea.hbm %s739_s2, 16 }
  0x41   : > { %v227_v29 = vmul.f32 %v361_v3, %v226_v28  ;;  %v230_v33 = vstv %s686_s22  ;;  %p508_p8 = pneg %p507_p4  ;;  %p511_p10 = scmp.lt.s32.totalorder %s509_s18, %s505_s14 }
  0x42   : > { %v215_v30 = vadd.f32 %v214_v23, %v212_v26  ;;  %v224_v31 = vadd.f32 %v223_v27, %v220_v24  ;;  %v235_v32 = vstv %s375_s23 }
  0x43   : > { %v236_v34 = vmul.f32 %v235_v32, %v178_v0  ;;  %v238_v35 = vstv %s376_s24  ;;  %p512_p2 = por %p511_p10, %p510_p9 }
  0x44   : > { %369 = vst.msk [vmem:[%s175_s3 + $0x1] ss:$4 sm:$0x3] %vm688_vm0, %v215_v30  ;;  %v228_v36 = vadd.f32 %v227_v29, %v224_v31  ;;  %v239_v37 = vmul.f32 %v360_v1, %v238_v35  ;;  %v242_v38 = vstv %s377_s28 }
  0x45   : > { %v243_v39 = vmul.f32 %v361_v3, %v242_v38  ;;  %v246_v42 = vstv %s378_s30  ;;  %p513_p11 = pnand %p512_p2, %p508_p8 }
  0x46   : > { %v231_v40 = vadd.f32 %v230_v33, %v228_v36  ;;  %v240_v41 = vadd.f32 %v239_v37, %v236_v34 }
  0x48   : > { %374 = vst.msk [vmem:[%s175_s3 + $0x2] ss:$4 sm:$0x3] %vm688_vm0, %v231_v40  ;;  %v244_v43 = vadd.f32 %v243_v39, %v240_v41 }
  0x4a   : > { %v247_v44 = vadd.f32 %v246_v42, %v244_v43 }
  0x4c   : > { %379 = vst.msk [vmem:[%s175_s3 + $0x3] ss:$4 sm:$0x3] %vm688_vm0, %v247_v44 }
  0x4d   : > { %516 = shalt.err (!%p513_p11)
}
  0x4e   : > { %393 = dma.vmem_to_hbm [thread:$0]  (%p643_p3), %s265_s13, 128, %s267_s6, %s251_s7  }
  0x4f PF: > { %s278_s27 = sand.u32 1, %s547_s9   ;;  %p747_p12 = scmp.ge.s32.totalorder %s559_s12, 2 }
  0x50   : > { %s279_s23 = scalar_lea.sflag [#allocation4], %s278_s27 }
  0x51   : > { %p404_p13 = pnand %p747_p12, %p612_p6 }
  0x53   : > { %p405_p0 = pneg %p404_p13 }
  0x55   : > { %542 = dma.done.wait (%p405_p0), %s279_s23, 128  }
  0x56   : > { %544 = vsyncadd (%p405_p0), %s279_s23, 4294967168  ;;  %p16_p5 = scmp.ge.s32.totalorder %s628_s21, 4   ;;  %s748_s9 = smov %s551_s10 }
  0x57   : > { %s749_s10 = smov %s555_s11  ;;  %s750_s11 = smov %s638_s25 }
  0x58   : > { %s751_s12 = smov %s628_s21  ;;  %18 = sbr.rel (!%p16_p5) target bundleno = 6 (0x6), region = 83 }
  0x5d   :  { %285 = vsyncpa [#allocation3], 1 }
  0x5e   :  { %287 = vsyncpa [#allocation3 + $0x1], 1 }
  0x5f   :  { %288 = vsyncpa [#allocation4], 1 }
  0x60   :  { %290 = vsyncpa [#allocation4 + $0x1], 1 }
  0x61   :  { %291 = vsyncpa [#allocation5], 1 }
  0x62   :  { %293 = vsyncpa [#allocation5 + $0x1], 1 }

</bundles_post_ra>
